<compile_context>
chip_gen: v7x
topology: tpu7x:2x2x1
jax: 0.10.0
libtpu: 0.0.40
codegen_flags: <defaults>
</compile_context>

<pallas_src>
import numpy as np
import jax
import jax.numpy as jnp
from jax.experimental import pallas as pl
from jax.experimental.pallas import tpu as pltpu

# ---- torchaudio.transforms.MelSpectrogram defaults for n_fft=400 -----------------
N_FFT = 400
WIN_LEN = 400                  # win_length = n_fft
HOP = 200                      # hop_length = win_length // 2
N_FREQS = N_FFT // 2 + 1       # 201 one-sided rfft bins
NPAD = 256                     # 201 -> 2 full lane tiles (padded bins are exactly zero)
N_MELS = 64
NORM_EPS = 1e-9                # eps from the PyTorch forward()
MAX_TILE_M = 512               # frames per grid step (multiple of 16)

# MXU input dtype for the dominant DFT matmuls.  bfloat16 gives ~2-4x MXU throughput
# and halves the frame DMA bytes (per perf review); jnp.float32 recovers exact f32
# semantics at the cost of speed.
MATMUL_DTYPE = jnp.bfloat16


def _round_up(x, n):
    return -(-x // n) * n


# ---- constant construction (host-side, deterministic) -----------------------------
def _hz_to_mel(f):
    return 2595.0 * np.log10(1.0 + f / 700.0)          # HTK mel scale (torchaudio default)


def _mel_to_hz(m):
    return 700.0 * (10.0 ** (m / 2595.0) - 1.0)


def _mel_filterbank_padded(sample_rate):
    """torchaudio.functional.melscale_fbanks(201, 0, sr//2, 64, sr, norm=None, 'htk'),
    zero-padded on the frequency axis from 201 to NPAD rows -> (NPAD, N_MELS)."""
    f_max = float(sample_rate // 2)                      # torchaudio uses sample_rate // 2
    all_freqs = np.linspace(0.0, f_max, N_FREQS)
    m_pts = np.linspace(_hz_to_mel(0.0), _hz_to_mel(f_max), N_MELS + 2)
    f_pts = _mel_to_hz(m_pts)
    f_diff = f_pts[1:] - f_pts[:-1]                      # (N_MELS + 1,)
    slopes = f_pts[None, :] - all_freqs[:, None]         # (201, N_MELS + 2)
    down = -slopes[:, :-2] / f_diff[:-1]
    up = slopes[:, 2:] / f_diff[1:]
    fb = np.maximum(0.0, np.minimum(down, up))           # (201, 64)
    fb_pad = np.zeros((NPAD, N_MELS), dtype=np.float64)
    fb_pad[:N_FREQS] = fb
    return fb_pad.astype(np.float32)


def _windowed_dft_halves():
    """[hann * cos | hann * (-sin)] for the 400-pt one-sided DFT (bins zero-padded
    201 -> 256 per half), split into the rows that multiply the current chunk
    (D_top = rows 0..199) and the next chunk (D_bot = rows 200..399)."""
    n = np.arange(N_FFT, dtype=np.float64)
    k = np.arange(N_FREQS, dtype=np.float64)
    ang = 2.0 * np.pi * np.outer(n, k) / N_FFT            # (400, 201)
    window = 0.5 - 0.5 * np.cos(2.0 * np.pi * n / WIN_LEN)   # torch.hann_window (periodic)
    d = np.zeros((N_FFT, 2 * NPAD), dtype=np.float64)
    d[:, :N_FREQS] = np.cos(ang) * window[:, None]
    d[:, NPAD:NPAD + N_FREQS] = -np.sin(ang) * window[:, None]
    d = d.astype(np.float32)
    return d[:HOP], d[HOP:]                                # each (200, 512)


# ---- Pallas kernels ----------------------------------------------------------------
def normalize_kernel(sc_ref, x_ref, o_ref):
    # (x - mean) * 1/(std + eps); mean and scale are scalars in SMEM.
    o_ref[...] = (x_ref[...] - sc_ref[0]) * sc_ref[1]


# ---- wrapper -----------------------------------------------------------------------
def mel_spec_transform(waveform, sample_rate=16000):
    assert waveform.ndim == 2 and waveform.shape[0] == 1, \
        "module's squeeze()/permute(1,0) assumes a single-channel waveform"
    wav = waveform[0].astype(jnp.float32)
    num_samples = wav.shape[0]

    # --- torch.stft(center=True, pad_mode='reflect', hop=200) framing, chunk-wise ----
    pad = N_FFT // 2
    padded = jnp.pad(wav, (pad, pad), mode="reflect")      # length num_samples + 400
    m = 1 + num_samples // HOP                             # STFT frame count

    # Tile size: big enough to amortize the ~0.35us/step overhead, small enough that
    # the grid keeps >= 2 steps (megacore sharding on v7x) and VMEM stays tiny.
    tile_m = min(MAX_TILE_M, _round_up(max(-(-m // 2), 8), 16))
    num_tiles = -(-m // tile_m)
    padded_m = num_tiles * tile_m

    # Contiguous HOP-sized chunks of the padded waveform, cast to the matmul dtype in
    # the wrapper so the pass-1 HBM DMA is already bf16.  Frame r = [chunk_r | chunk_{r+1}].
    total_rows = padded_m + 1
    target = total_rows * HOP
    if padded.shape[0] >= target:
        flat = padded[:target]
    else:
        flat = jnp.pad(padded, (0, target - padded.shape[0]))
    chunks = flat.reshape(total_rows, HOP).astype(MATMUL_DTYPE)   # (padded_m+1, 200)
    chunks_nxt = chunks[1:total_rows]                             # (padded_m, 200), contiguous copy

    d_top_np, d_bot_np = _windowed_dft_halves()
    d_top = jnp.asarray(d_top_np, dtype=MATMUL_DTYPE)             # (200, 512)
    d_bot = jnp.asarray(d_bot_np, dtype=MATMUL_DTYPE)             # (200, 512)
    fb = jnp.asarray(_mel_filterbank_padded(sample_rate), dtype=MATMUL_DTYPE)  # (256, 64)

    # --- pass 1: mel power spectrogram + per-tile (sum, sum_sq) stats -----------------
    def melspec_kernel(cur_ref, nxt_ref, dtop_ref, dbot_ref, fb_ref, mel_ref, stats_ref):
        # windowed one-sided DFT of frame r = chunk_r @ D_top + chunk_{r+1} @ D_bot
        spec = (jnp.dot(cur_ref[...], dtop_ref[...], preferred_element_type=jnp.float32)
                + jnp.dot(nxt_ref[...], dbot_ref[...], preferred_element_type=jnp.float32))
        re = spec[:, :NPAD]
        im = spec[:, NPAD:]
        power = re * re + im * im                                  # |rfft|^2 (pad bins = 0)

        # mel filterbank (HTK, norm=None); padded frequency rows are zero -> exact
        mel = jnp.dot(power.astype(fb_ref.dtype), fb_ref[...],
                      preferred_element_type=jnp.float32)          # (tile_m, 64)
        mel_ref[...] = mel

        # mask padding frames out of the global statistics (lane-dense (1,128) row)
        row = (jax.lax.broadcasted_iota(jnp.int32, (tile_m, 1), 0)
               + pl.program_id(0) * tile_m)
        mel_v = jnp.where(row < m, mel, 0.0)
        stats_ref[:, :N_MELS] = jnp.sum(mel_v, axis=0, keepdims=True)
        stats_ref[:, N_MELS:] = jnp.sum(mel_v * mel_v, axis=0, keepdims=True)

    mel_padded, stats = pl.pallas_call(
        melspec_kernel,
        out_shape=(jax.ShapeDtypeStruct((padded_m, N_MELS), jnp.float32),
                   jax.ShapeDtypeStruct((num_tiles, 1, 2 * N_MELS), jnp.float32)),
        grid=(num_tiles,),
        in_specs=[
            pl.BlockSpec((tile_m, HOP), lambda i: (i, 0)),          # current chunks
            pl.BlockSpec((tile_m, HOP), lambda i: (i, 0)),          # next-chunk view
            pl.BlockSpec((HOP, 2 * NPAD), lambda i: (0, 0)),        # resident D_top
            pl.BlockSpec((HOP, 2 * NPAD), lambda i: (0, 0)),        # resident D_bot
            pl.BlockSpec((NPAD, N_MELS), lambda i: (0, 0)),         # resident mel banks
        ],
        out_specs=(
            pl.BlockSpec((tile_m, N_MELS), lambda i: (i, 0)),
            pl.BlockSpec((None, 1, 2 * N_MELS), lambda i: (i, 0, 0)),
        ),
        compiler_params=pltpu.CompilerParams(dimension_semantics=("parallel",)),
    )(chunks, chunks_nxt, d_top, d_bot, fb)

    # --- scalar reduction of the partial stats (tiny glue) ---------------------------
    # NOTE: E[x^2]-mean^2 in f32 can lose precision for very long inputs; clamped >= 0.
    st = stats.reshape(num_tiles, 2, N_MELS)
    totals = jnp.sum(st, axis=(0, 2))                               # [sum, sum_sq]
    count = jnp.float32(m * N_MELS)                                 # real (unpadded) elements
    mean = totals[0] / count
    var = jnp.maximum(totals[1] / count - mean * mean, 0.0)         # population variance
    scale = 1.0 / (jnp.sqrt(var) + NORM_EPS)
    sc = jnp.stack([mean, scale]).astype(jnp.float32)               # (2,) scalars -> SMEM

    # --- pass 2: global normalization on a lane-dense (rows, 128) view ---------------
    rows2 = padded_m * N_MELS // 128                                # free row-major reshape
    tile_r = tile_m * N_MELS // 128
    mel2 = mel_padded.reshape(rows2, 128)
    out2 = pl.pallas_call(
        normalize_kernel,
        out_shape=jax.ShapeDtypeStruct((rows2, 128), jnp.float32),
        grid=(num_tiles,),
        in_specs=[
            pl.BlockSpec(memory_space=pltpu.MemorySpace.SMEM),      # (mean, 1/(std+eps))
            pl.BlockSpec((tile_r, 128), lambda i: (i, 0)),
        ],
        out_specs=pl.BlockSpec((tile_r, 128), lambda i: (i, 0)),
        compiler_params=pltpu.CompilerParams(dimension_semantics=("parallel",)),
    )(sc, mel2)

    return out2.reshape(padded_m, N_MELS)[:m]                       # (time, n_mels)


if __name__ == "__main__":
    key = jax.random.PRNGKey(0)
    # 1 channel, 3200 samples (0.2 s @ 16 kHz) -> 1 + 3200 // 200 = 17 frames
    waveform = 0.1 * jax.random.normal(key, (1, 3200), dtype=jnp.float32)

    feats = mel_spec_transform(waveform, sample_rate=16000)
    feats = jax.block_until_ready(feats)

    expected_frames = 1 + 3200 // HOP
    assert feats.shape == (expected_frames, N_MELS), feats.shape
    assert feats.dtype == jnp.float32
    assert bool(jnp.all(jnp.isfinite(feats)))
    print("KERNEL_OK")
</pallas_src>

<mosaic_0001>
module attributes {stable_mosaic.version = 11 : i64} {
  func.func @melspec_kernel(%arg0: i32, %arg1: memref<16x200xbf16, #tpu.memory_space<vmem>>, %arg2: memref<16x200xbf16, #tpu.memory_space<vmem>>, %arg3: memref<200x512xbf16, #tpu.memory_space<vmem>>, %arg4: memref<200x512xbf16, #tpu.memory_space<vmem>>, %arg5: memref<256x64xbf16, #tpu.memory_space<vmem>>, %arg6: memref<16x64xf32, #tpu.memory_space<vmem>>, %arg7: memref<1x1x128xf32, #tpu.memory_space<vmem>>) attributes {dimension_semantics = [#tpu.dimension_semantics<parallel>], iteration_bounds = array<i64: 2>, scalar_prefetch = 0 : i64, scratch_operands = 0 : i64, tpu.core_type = #tpu.core_type<tc>, window_params = [{transform_indices = @transform_0, window_bounds = array<i64: 16, 200>}, {transform_indices = @transform_1, window_bounds = array<i64: 16, 200>}, {pipeline_mode = #tpu.pipeline_mode<synchronous>, transform_indices = @transform_2, window_bounds = array<i64: 200, 512>}, {pipeline_mode = #tpu.pipeline_mode<synchronous>, transform_indices = @transform_3, window_bounds = array<i64: 200, 512>}, {pipeline_mode = #tpu.pipeline_mode<synchronous>, transform_indices = @transform_4, window_bounds = array<i64: 256, 64>}, {transform_indices = @transform_5, window_bounds = array<i64: 16, 64>}, {transform_indices = @transform_6, window_bounds = array<i64: 1, 1, 128>}]} {
    %c0 = arith.constant 0 : index
    %c0_0 = arith.constant 0 : index
    %0 = vector.load %arg1[%c0, %c0_0] : memref<16x200xbf16, #tpu.memory_space<vmem>>, vector<16x200xbf16>
    %c0_1 = arith.constant 0 : index
    %c0_2 = arith.constant 0 : index
    %1 = vector.load %arg3[%c0_1, %c0_2] : memref<200x512xbf16, #tpu.memory_space<vmem>>, vector<200x512xbf16>
    %cst = arith.constant dense<0.000000e+00> : vector<16x512xf32>
    %2 = tpu.matmul %0, %1, %cst {dimension_numbers = #tpu.dot_dimension_numbers<[1], [0], [0], [1], [0, 0, 1, 1], [], []>} : vector<16x200xbf16>, vector<200x512xbf16>, vector<16x512xf32> -> vector<16x512xf32>
    %c0_3 = arith.constant 0 : index
    %c0_4 = arith.constant 0 : index
    %3 = vector.load %arg2[%c0_3, %c0_4] : memref<16x200xbf16, #tpu.memory_space<vmem>>, vector<16x200xbf16>
    %c0_5 = arith.constant 0 : index
    %c0_6 = arith.constant 0 : index
    %4 = vector.load %arg4[%c0_5, %c0_6] : memref<200x512xbf16, #tpu.memory_space<vmem>>, vector<200x512xbf16>
    %cst_7 = arith.constant dense<0.000000e+00> : vector<16x512xf32>
    %5 = tpu.matmul %3, %4, %cst_7 {dimension_numbers = #tpu.dot_dimension_numbers<[1], [0], [0], [1], [0, 0, 1, 1], [], []>} : vector<16x200xbf16>, vector<200x512xbf16>, vector<16x512xf32> -> vector<16x512xf32>
    %6 = arith.addf %2, %5 : vector<16x512xf32>
    %7 = vector.extract_strided_slice %6 {offsets = [0, 0], sizes = [16, 256], strides = [1, 1]} : vector<16x512xf32> to vector<16x256xf32>
    %8 = vector.extract_strided_slice %6 {offsets = [0, 256], sizes = [16, 256], strides = [1, 1]} : vector<16x512xf32> to vector<16x256xf32>
    %9 = arith.mulf %7, %7 : vector<16x256xf32>
    %10 = arith.mulf %8, %8 : vector<16x256xf32>
    %11 = arith.addf %9, %10 : vector<16x256xf32>
    %12 = arith.truncf %11 : vector<16x256xf32> to vector<16x256xbf16>
    %c0_8 = arith.constant 0 : index
    %c0_9 = arith.constant 0 : index
    %13 = vector.load %arg5[%c0_8, %c0_9] : memref<256x64xbf16, #tpu.memory_space<vmem>>, vector<256x64xbf16>
    %cst_10 = arith.constant dense<0.000000e+00> : vector<16x64xf32>
    %14 = tpu.matmul %12, %13, %cst_10 {dimension_numbers = #tpu.dot_dimension_numbers<[1], [0], [0], [1], [0, 0, 1, 1], [], []>} : vector<16x256xbf16>, vector<256x64xbf16>, vector<16x64xf32> -> vector<16x64xf32>
    %c0_11 = arith.constant 0 : index
    %c0_12 = arith.constant 0 : index
    %15 = vector.load %arg6[%c0_11, %c0_12] : memref<16x64xf32, #tpu.memory_space<vmem>>, vector<16x64xf32>
    tpu.vector_store %arg6[%c0_11, %c0_12], %14 {strides = array<i32>} : memref<16x64xf32, #tpu.memory_space<vmem>>, vector<16x64xf32>,
    %16 = tpu.iota {dimensions = array<i32: 0>} : vector<16x1xi32>
    %c16_i32 = arith.constant 16 : i32
    %17 = arith.muli %arg0, %c16_i32 : i32
    %18 = vector.broadcast %17 : i32 to vector<16x1xi32>
    %19 = arith.addi %16, %18 : vector<16x1xi32>
    %c17_i32 = arith.constant 17 : i32
    %20 = vector.broadcast %c17_i32 : i32 to vector<16x1xi32>
    %21 = arith.cmpi slt, %19, %20 : vector<16x1xi32>
    %cst_13 = arith.constant 0.000000e+00 : f32
    %22 = vector.shape_cast %21 : vector<16x1xi1> to vector<16x1xi1>
    %23 = vector.broadcast %22 : vector<16x1xi1> to vector<16x64xi1>
    %24 = vector.broadcast %cst_13 : f32 to vector<16x64xf32>
    %25 = arith.select %23, %14, %24 : vector<16x64xi1>, vector<16x64xf32>
    %cst_14 = arith.constant dense<0.000000e+00> : vector<64xf32>
    %26 = vector.multi_reduction <add>, %25, %cst_14 [0] : vector<16x64xf32> to vector<64xf32>
    %27 = vector.shape_cast %26 : vector<64xf32> to vector<1x64xf32>
    %c0_15 = arith.constant 0 : index
    %c0_16 = arith.constant 0 : index
    %c0_17 = arith.constant 0 : index
    %28 = vector.load %arg7[%c0_15, %c0_16, %c0_17] : memref<1x1x128xf32, #tpu.memory_space<vmem>>, vector<1x1x64xf32>
    %29 = vector.shape_cast %28 : vector<1x1x64xf32> to vector<1x64xf32>
    %30 = vector.shape_cast %27 : vector<1x64xf32> to vector<1x1x64xf32>
    tpu.vector_store %arg7[%c0_15, %c0_16, %c0_17], %30 {strides = array<i32>} : memref<1x1x128xf32, #tpu.memory_space<vmem>>, vector<1x1x64xf32>,
    %31 = arith.mulf %25, %25 : vector<16x64xf32>
    %cst_18 = arith.constant dense<0.000000e+00> : vector<64xf32>
    %32 = vector.multi_reduction <add>, %31, %cst_18 [0] : vector<16x64xf32> to vector<64xf32>
    %33 = vector.shape_cast %32 : vector<64xf32> to vector<1x64xf32>
    %c0_19 = arith.constant 0 : index
    %c0_20 = arith.constant 0 : index
    %c64 = arith.constant 64 : index
    %34 = vector.load %arg7[%c0_19, %c0_20, %c64] : memref<1x1x128xf32, #tpu.memory_space<vmem>>, vector<1x1x64xf32>
    %35 = vector.shape_cast %34 : vector<1x1x64xf32> to vector<1x64xf32>
    %36 = vector.shape_cast %33 : vector<1x64xf32> to vector<1x1x64xf32>
    tpu.vector_store %arg7[%c0_19, %c0_20, %c64], %36 {strides = array<i32>} : memref<1x1x128xf32, #tpu.memory_space<vmem>>, vector<1x1x64xf32>,
    return
  }
  func.func @transform_0(%arg0: i32) -> (i32, i32) {
    %c0_i32 = arith.constant 0 : i32
    %c0_i32_0 = arith.constant 0 : i32
    return %arg0, %c0_i32 : i32, i32
  }
  func.func @transform_1(%arg0: i32) -> (i32, i32) {
    %c0_i32 = arith.constant 0 : i32
    %c0_i32_0 = arith.constant 0 : i32
    return %arg0, %c0_i32 : i32, i32
  }
  func.func @transform_2(%arg0: i32) -> (i32, i32) {
    %c0_i32 = arith.constant 0 : i32
    %c0_i32_0 = arith.constant 0 : i32
    %c0_i32_1 = arith.constant 0 : i32
    return %c0_i32, %c0_i32_0 : i32, i32
  }
  func.func @transform_3(%arg0: i32) -> (i32, i32) {
    %c0_i32 = arith.constant 0 : i32
    %c0_i32_0 = arith.constant 0 : i32
    %c0_i32_1 = arith.constant 0 : i32
    return %c0_i32, %c0_i32_0 : i32, i32
  }
  func.func @transform_4(%arg0: i32) -> (i32, i32) {
    %c0_i32 = arith.constant 0 : i32
    %c0_i32_0 = arith.constant 0 : i32
    %c0_i32_1 = arith.constant 0 : i32
    return %c0_i32, %c0_i32_0 : i32, i32
  }
  func.func @transform_5(%arg0: i32) -> (i32, i32) {
    %c0_i32 = arith.constant 0 : i32
    %c0_i32_0 = arith.constant 0 : i32
    return %arg0, %c0_i32 : i32, i32
  }
  func.func @transform_6(%arg0: i32) -> (i32, i32, i32) {
    %c0_i32 = arith.constant 0 : i32
    %c0_i32_0 = arith.constant 0 : i32
    %c0_i32_1 = arith.constant 0 : i32
    return %arg0, %c0_i32, %c0_i32_0 : i32, i32, i32
  }
}

</mosaic_0001>

<bundles_post_ra>
// kernel: tpu_custom_call.1
= control target key start
LH: loop header
LB: loop body
LE: loop exit
PB: predicated region body
PF: predicated region fallthrough
CT: control target
= control target key end

     0   :  { %12 = vsyncpa [#allocation3], 0  ;;  %s2487_s0 = inlined_call_operand.vmem [shape: bf16[33,200], index: 0, kind: input, shape index: {}]   ;;  %s2488_s1 = inlined_call_operand.vmem [shape: bf16[32,200], index: 1, kind: input, shape index: {}]   ;;  %s2489_s2 = inlined_call_operand.hbm [shape: bf16[200,512], index: 2, kind: input, shape index: {}]   ;;  %s2490_s3 = inlined_call_operand.hbm [shape: bf16[200,512], index: 3, kind: input, shape index: {}]   ;;  %s2491_s4 = inlined_call_operand.vmem [shape: bf16[256,64], index: 4, kind: input, shape index: {}]   ;;  %s2492_s5 = inlined_call_operand.hbm [shape: f32[32,64], index: 5, kind: output, shape index: {0}]   ;;  %s2493_s6 = inlined_call_operand.hbm [shape: f32[2,1,128], index: 6, kind: output, shape index: {1}]  }
   0x1   :  { %13 = vsyncpa [#allocation6], 0 }
   0x2   :  { %14 = vsyncpa [#allocation4], 0 }
   0x3   :  { %16 = vsyncpa [#allocation4 + $0x1], 0 }
   0x4   :  { %17 = vsyncpa [#allocation9], 0 }
   0x5   :  { %19 = vsyncpa [#allocation9 + $0x1], 0  ;;  %s2192_s21 = smov 0   ;;  %s2194_s22 = smov 0  }
   0x6   :  { %s2196_s23 = smov 0   ;;  %s2198_s24 = smov 0  }
   0x7 LB: > { %s2213_s25 = sadd.s32 4294967295, %s2146_s24   ;;  %s1557_s26 = sadd.s32 4294967294, %s2146_s24   ;;  %s2146_s24 = sphi %s2198_s24, %s2511_s24   ;;  %s2142_s23 = sphi %s2196_s23, %s2510_s23   ;;  %s2138_s22 = sphi %s2194_s22, %s2509_s22   ;;  %s2134_s21 = sphi %s2192_s21, %s2508_s21  }
   0x8   : > { %s2217_s27 = sadd.s32 1, %s2146_s24   ;;  %s147_s28 = sadd.s32 1, %s2142_s23 }
   0x9   : > { %s144_s29 = ssub.s32 %s2146_s24, %s2217_s27  ;;  %p157_p0 = scmp.ne.s32.totalorder %s2142_s23, %s2138_s22 }
   0xa   : > { %p145_p1 = scmp.eq.s32.totalorder %s144_s29, 0  ;;  %p158_p2 = scmp.eq.s32.totalorder %s2213_s25, 1 }
   0xb   : > { %p163_p3 = scmp.ne.s32.totalorder %s2138_s22, %s2134_s21  ;;  %p164_p4 = scmp.eq.s32.totalorder %s1557_s26, 1 }
   0xc   : > { %s2228_s30 = scalar_select %p145_p1, %s2142_s23, %s147_s28  }
   0xd   : > { %p2230_p5 = por %p158_p2, %p157_p0  ;;  %p2234_p6 = por %p164_p4, %p163_p3 }
   0xe   : > { %p1558_p7 = scmp.ge.s32.totalorder %s2146_s24, 1  ;;  %p197_p8 = scmp.lt.s32.totalorder %s2146_s24, 3 }
   0xf   : > { %s2497_s7 = scalar_select %p2230_p5, 1, 0 }
  0x10   : > { %s2498_s8 = scalar_select %p2234_p6, 1, 0 }
  0x11   : > { %p2494_p9 = scmp.eq.s32.totalorder %s2213_s25, 0  ;;  %p2241_p10 = pnand %p1558_p7, %p197_p8 }
  0x12   : > { %s2148_s10 = smov [#allocation2]   ;;  %s2149_s13 = smov [#allocation5]  }
  0x13   : > { %s2499_s9 = scalar_select %p2241_p10, 1, 0 }
  0x14   : > { %s209_s11 = sshll.u32 %s2148_s10, 4  ;;  %p1756_p11 = pneg %p2241_p10  ;;  %s210_s11 = int_to_ptr.vmem [resolvable:$true] %s209_s11 }
  0x15   : > { %s222_s14 = sshll.u32 %s2149_s13, 4  ;;  %s1988_s17 = scalar_lea.hbm %s2489_s2, 6400  ;;  %s2253_s14 = int_to_ptr.vmem [resolvable:$true] %s222_s14 }
  0x16   : > { %p2249_p12 = pnand %p2494_p9, %p1756_p11  ;;  %p1989_p13 = scmp.ne.s32.totalorder %s2489_s2, %s1988_s17 }
  0x17   : > { %p1995_p3 = scmp.lt.u32.totalorder %s1988_s17, %s2489_s2 }
  0x18   : > { %p1990_p0 = pneg %p2249_p12 }
  0x1a   : > { %p1991_p1 = pnand %p1990_p0, %p1989_p13 }
  0x1c   : > { %p1992_p2 = pneg %p1991_p1 }
  0x1e   : > { %p1997_p4 = pnand %p1995_p3, %p1992_p2 }
  0x20   : > { %2000 = shalt.err (!%p1997_p4)
}
  0x21   : > { %s2001_s28 = scalar_lea.vmem %s210_s11, 6400  ;;  %p2009_p9 = scmp.lt.s32.totalorder %s210_s11, %s210_s11 }
  0x22   : > { %p2002_p7 = scmp.ne.s32.totalorder %s210_s11, %s2001_s28  ;;  %p2010_p6 = scmp.lt.s32.totalorder %s2001_s28, %s2001_s28 }
  0x24   : > { %p2004_p8 = pnand %p2002_p7, %p1990_p0  ;;  %p2011_p5 = por %p2010_p6, %p2009_p9 }
  0x26   : > { %p2005_p11 = pneg %p2004_p8 }
  0x28   : > { %p2012_p10 = pnand %p2011_p5, %p2005_p11 }
  0x2a   : > { %2015 = shalt.err (!%p2012_p10)
}
  0x2b   : > { %s2150_s29 = smov 256   ;;  %s2151_s10 = smov 16  }
  0x2c   : > { %1759 = dma.hbm_to_vmem [thread:$0]  (!%p2249_p12), %s2489_s2, 6400, %s210_s11, [#allocation3], %s2150_s29, %s2150_s29, %s2151_s10  }
  0x2d   : > { %s2016_s18 = scalar_lea.hbm %s2490_s3, 6400 }
  0x2e   : > { %p2017_p13 = scmp.ne.s32.totalorder %s2490_s3, %s2016_s18  ;;  %p2023_p9 = scmp.lt.u32.totalorder %s2016_s18, %s2490_s3 }
  0x30   : > { %p2019_p5 = pnand %p2017_p13, %p1990_p0 }
  0x32   : > { %p2020_p6 = pneg %p2019_p5 }
  0x34   : > { %p2025_p10 = pnand %p2023_p9, %p2020_p6 }
  0x36   : > { %2028 = shalt.err (!%p2025_p10)
}
  0x37   : > { %s2029_s11 = scalar_lea.vmem %s2253_s14, 6400  ;;  %p2037_p4 = scmp.lt.s32.totalorder %s2253_s14, %s2253_s14 }
  0x38   : > { %p2030_p1 = scmp.ne.s32.totalorder %s2253_s14, %s2029_s11  ;;  %p2038_p7 = scmp.lt.s32.totalorder %s2029_s11, %s2029_s11 }
  0x3a   : > { %p2032_p2 = pnand %p2030_p1, %p1990_p0  ;;  %p2039_p8 = por %p2038_p7, %p2037_p4 }
  0x3c   : > { %p2033_p3 = pneg %p2032_p2 }
  0x3e   : > { %p2040_p11 = pnand %p2039_p8, %p2033_p3 }
  0x40   : > { %2043 = shalt.err (!%p2040_p11)
}
  0x41   : > { %1762 = dma.hbm_to_vmem [thread:$0]  (!%p2249_p12), %s2490_s3, 6400, %s2253_s14, [#allocation6], %s2150_s29, %s2150_s29, %s2151_s10  }
  0x42   : > { %p2501_p13 = scmp.ne.s32.totalorder %s2499_s9, 0 }
  0x43   : > { %p2502_p5 = scmp.eq.s32.totalorder (!%p2501_p13), %s2213_s25, 0 }
  0x44   : > { %271 = sbr.rel (%p2501_p13) target bundleno = 782 (0x30e), region = 40 }
  0x4b   : > { %2117 = dma.done.wait (%p2502_p5), [#allocation3], 6400   ;;  %p2503_p0 = pmov %p2502_p5 }
  0x4d   : > { %2119 = vsyncadd (%p2503_p0), [#allocation3], 4294960896  ;;  %p2504_p6 = pmov %p2503_p0 }
  0x4e   : > { %p2505_p9 = pmov %p2503_p0 }
  0x4f   : > { %2121 = dma.done.wait (%p2504_p6), [#allocation6], 6400  }
  0x50   : > { %2123 = vsyncadd (%p2505_p9), [#allocation6], 4294960896  ;;  %v1814_v0 = vld [vmem:[#allocation5 + $0x4] ss:$16 sps:$4 sm:$0xff]   ;;  %v1816_v1 = vld [vmem:[#allocation5 + $0xc] ss:$16 sps:$4 sm:$0xff]  }
  0x51   : > { %727 = vmatprep.subr.bf16.mxu0 %v1814_v0  ;;  %v1818_v2 = vld [vmem:[#allocation5] ss:$16 sps:$4 sm:$0xff]   ;;  %v1819_v3 = vld [vmem:[#allocation5 + $0x8] ss:$16 sps:$4 sm:$0xff]   ;;  %770 = vmatprep.subr.bf16.mxu1 %v1816_v1  ;;  %v1820_v4 = vld [vmem:[#allocation5 + $0x24] ss:$16 sps:$4 sm:$0xff]  }
  0x52   : > { %728 = vmatpush1.bf16.msra.mxu0 %v1818_v2  ;;  %771 = vmatpush1.bf16.msra.mxu1 %v1819_v3  ;;  %v1822_v5 = vld [vmem:[#allocation5 + $0x2c] ss:$16 sps:$4 sm:$0xff]   ;;  %v1824_v6 = vld [vmem:[#allocation5 + $0x20] ss:$16 sps:$4 sm:$0xff]   ;;  %v1825_v7 = vld [vmem:[#allocation5 + $0x28] ss:$16 sps:$4 sm:$0xff]  }
  0x53   : > { %729 = vmatprep.subr.bf16.mxu0 %v1820_v4  ;;  %772 = vmatprep.subr.bf16.mxu1 %v1822_v5  ;;  %v1826_v8 = vld [vmem:[#allocation5 + $0x44] ss:$16 sps:$4 sm:$0xff]   ;;  %v1828_v9 = vld [vmem:[#allocation5 + $0x4c] ss:$16 sps:$4 sm:$0xff]   ;;  %v1830_v10 = vld [vmem:[#allocation5 + $0x40] ss:$16 sps:$4 sm:$0xff]  }
  0x54   : > { %v1831_v11 = vld [vmem:[#allocation5 + $0x48] ss:$16 sps:$4 sm:$0xff]   ;;  %v1832_v12 = vld [vmem:[#allocation5 + $0x64] ss:$16 sps:$4 sm:$0xff]   ;;  %v1834_v13 = vld [vmem:[#allocation5 + $0x6c] ss:$16 sps:$4 sm:$0xff]  }
  0x55   : > { %v1836_v14 = vld [vmem:[#allocation5 + $0x60] ss:$16 sps:$4 sm:$0xff]   ;;  %v1837_v15 = vld [vmem:[#allocation5 + $0x68] ss:$16 sps:$4 sm:$0xff]   ;;  %v1838_v16 = vld [vmem:[#allocation5 + $0x84] ss:$16 sps:$4 sm:$0xff]  }
  0x56   : > { %730 = vmatpush1.bf16.msra.mxu0 %v1824_v6  ;;  %773 = vmatpush1.bf16.msra.mxu1 %v1825_v7  ;;  %v1840_v17 = vld [vmem:[#allocation5 + $0x8c] ss:$16 sps:$4 sm:$0xff]   ;;  %v1842_v18 = vld [vmem:[#allocation5 + $0x80] ss:$16 sps:$4 sm:$0xff]   ;;  %v1843_v19 = vld [vmem:[#allocation5 + $0x88] ss:$16 sps:$4 sm:$0xff]  }
  0x57   : > { %731 = vmatprep.subr.bf16.mxu0 %v1826_v8  ;;  %774 = vmatprep.subr.bf16.mxu1 %v1828_v9  ;;  %v1844_v20 = vld [vmem:[#allocation5 + $0xa4] ss:$16 sps:$4 sm:$0xff]   ;;  %s2313_s9 = sshll.u32 %s2213_s25, 1  ;;  %v1846_v21 = vld [vmem:[#allocation5 + $0xac] ss:$16 sps:$4 sm:$0xff]   ;;  %vm710_vm0 = vcmask 588800  }
  0x58   : > { %v1848_v22 = vld [vmem:[#allocation5 + $0xa0] ss:$16 sps:$4 sm:$0xff]   ;;  %p339_p12 = scmp.lt.s32.totalorder %s2313_s9, 3  ;;  %v1849_v23 = vld [vmem:[#allocation5 + $0xa8] ss:$16 sps:$4 sm:$0xff]   ;;  %vm714_vm1 = vcmask 1043456  }
  0x59   : > { %v1850_v24 = vld [vmem:[#allocation5 + $0xc4] ss:$16 sps:$4 sm:$0xff]   ;;  %v1852_v25 = vld [vmem:[#allocation5 + $0xcc] ss:$16 sps:$4 sm:$0xff]   ;;  %v1854_v26 = vld [vmem:[#allocation5 + $0xc0] ss:$16 sps:$4 sm:$0xff]  }
  0x5a   : > { %732 = vmatpush1.bf16.msra.mxu0 %v1830_v10  ;;  %775 = vmatpush1.bf16.msra.mxu1 %v1831_v11  ;;  %v1855_v27 = vld [vmem:[#allocation5 + $0xc8] ss:$16 sps:$4 sm:$0xff]   ;;  %s340_s12 = scalar_select %p339_p12, %s2313_s9, 3  ;;  %v1856_v28 = vld [vmem:[#allocation5 + $0xe4] ss:$16 sps:$4 sm:$0xff]   ;;  %vm1356_vm2 = vcmask 523264  }
  0x5b   : > { %733 = vmatprep.subr.bf16.mxu0 %v1832_v12  ;;  %776 = vmatprep.subr.bf16.mxu1 %v1834_v13  ;;  %v1858_v29 = vld [vmem:[#allocation5 + $0xec] ss:$16 sps:$4 sm:$0xff]   ;;  %v1860_v30 = vld [vmem:[#allocation5 + $0xe0] ss:$16 sps:$4 sm:$0xff]   ;;  %v1861_v31 = vld [vmem:[#allocation5 + $0xe8] ss:$16 sps:$4 sm:$0xff]  }
  0x5c   : > { %s1712_s14 = sshll.u32 %s340_s12, 3  ;;  %v1862_v32 = vld [vmem:[#allocation5 + $0x104] ss:$16 sps:$4 sm:$0xff]   ;;  %v1864_v33 = vld [vmem:[#allocation5 + $0x10c] ss:$16 sps:$4 sm:$0xff]   ;;  %p327_p10 = scmp.lt.s32.totalorder %s2313_s9, 4 }
  0x5d   : > { %s2320_s16 = scalar_lea.vmem %s2488_s1, %s1712_s14  ;;  %v1866_v34 = vld [vmem:[#allocation5 + $0x100] ss:$16 sps:$4 sm:$0xff]   ;;  %v1867_v35 = vld [vmem:[#allocation5 + $0x108] ss:$16 sps:$4 sm:$0xff]   ;;  %v1868_v36 = vld [vmem:[#allocation5 + $0x124] ss:$16 sps:$4 sm:$0xff]  }
  0x5e   : > { %734 = vmatpush1.bf16.msra.mxu0 %v1836_v14  ;;  %777 = vmatpush1.bf16.msra.mxu1 %v1837_v15  ;;  %v1870_v37 = vld [vmem:[#allocation5 + $0x12c] ss:$16 sps:$4 sm:$0xff]   ;;  %v1872_v39 = vld [vmem:[#allocation5 + $0x120] ss:$16 sps:$4 sm:$0xff]   ;;  %v1873_v40 = vld [vmem:[#allocation5 + $0x128] ss:$16 sps:$4 sm:$0xff]  }
  0x5f   : > { %735 = vmatprep.subr.bf16.mxu0 %v1838_v16  ;;  %778 = vmatprep.subr.bf16.mxu1 %v1840_v17  ;;  %v1892_v38 = vld [vmem:[%s2320_s16 + $0x4] ss:$8 sps:$4 sm:$0xff]   ;;  %v1878_v43 = vld [vmem:[#allocation5 + $0x140] ss:$16 sps:$4 sm:$0xff]   ;;  %v1879_v44 = vld [vmem:[#allocation5 + $0x148] ss:$16 sps:$4 sm:$0xff]  }
  0x60   : > { %1627 = vmatprep.mubr.msk.bf16.mxu0 %vm710_vm0, %v1892_v38  ;;  %1629 = vmatprep.mubr.msk.bf16.mxu1 %vm710_vm0, %v1892_v38  ;;  %v1874_v41 = vld [vmem:[#allocation5 + $0x144] ss:$16 sps:$4 sm:$0xff]   ;;  %v1876_v42 = vld [vmem:[#allocation5 + $0x14c] ss:$16 sps:$4 sm:$0xff]   ;;  %v1884_v49 = vld [vmem:[#allocation5 + $0x160] ss:$16 sps:$4 sm:$0xff]  }
  0x61   : > { %v1880_v45 = vld [vmem:[#allocation5 + $0x164] ss:$16 sps:$4 sm:$0xff]   ;;  %v1882_v46 = vld [vmem:[#allocation5 + $0x16c] ss:$16 sps:$4 sm:$0xff]   ;;  %v1885_v50 = vld [vmem:[#allocation5 + $0x168] ss:$16 sps:$4 sm:$0xff]  }
  0x62   : > { %736 = vmatpush1.bf16.msra.mxu0 %v1842_v18  ;;  %779 = vmatpush1.bf16.msra.mxu1 %v1843_v19  ;;  %v449_v47 = vld [vmem:[#allocation5 + $0x180] sm:$0xff]  ;;  %v450_v48 = vld [vmem:[#allocation5 + $0x188] sm:$0xff]  ;;  %v1890_v59 = vld [vmem:[%s2320_s16] ss:$8 sps:$4 sm:$0xff]   ;;  %s2513_s9 = smov (!%p327_p10, %s2313_s9), 4  ;;  %s1704_s11 = sshll.u32 %s2213_s25, 4 }
  0x63   : > { %737 = vmatprep.subr.bf16.mxu0 %v1844_v20  ;;  %780 = vmatprep.subr.bf16.mxu1 %v1846_v21  ;;  %v1622_v51 = vcombine.low %v449_v47, %v449_v47  ;;  %v1623_v52 = vcombine.high %v449_v47, %v449_v47  ;;  %v1625_v53 = vcombine.high %v450_v48, %v450_v48  ;;  %v1895_v57 = vld [vmem:[#allocation2 + $0x4] ss:$16 sps:$4 sm:$0xff]   ;;  %v1898_v58 = vld [vmem:[#allocation2 + $0xc] ss:$16 sps:$4 sm:$0xff]   ;;  %v1893_v60 = vld [vmem:[#allocation2] ss:$16 sps:$4 sm:$0xff]  }
  0x64   : > { %v1624_v54 = vcombine.low %v450_v48, %v450_v48  ;;  %v1896_v61 = vld [vmem:[#allocation2 + $0x8] ss:$16 sps:$4 sm:$0xff]   ;;  %v1901_v62 = vld [vmem:[#allocation2 + $0x24] ss:$16 sps:$4 sm:$0xff]   ;;  %v1904_v63 = vld [vmem:[#allocation2 + $0x2c] ss:$16 sps:$4 sm:$0xff]  }
  0x65   : > { %v716_v55 = vsel %vm714_vm1, %v1622_v51, 0  ;;  %v1899_v0 = vld [vmem:[#allocation2 + $0x20] ss:$16 sps:$4 sm:$0xff]   ;;  %v1902_v1 = vld [vmem:[#allocation2 + $0x28] ss:$16 sps:$4 sm:$0xff]   ;;  %s1711_s17 = sshll.u32 %s2513_s9, 3 }
  0x66   : > { %738 = vmatpush1.bf16.msra.mxu0 %v1848_v22  ;;  %781 = vmatpush1.bf16.msra.mxu1 %v1849_v23  ;;  %v722_v56 = vsel %vm714_vm1, %v1624_v54, 0  ;;  %v1907_v2 = vld [vmem:[#allocation2 + $0x44] ss:$16 sps:$4 sm:$0xff]   ;;  %v1910_v3 = vld [vmem:[#allocation2 + $0x4c] ss:$16 sps:$4 sm:$0xff]   ;;  %s2335_s20 = scalar_lea.vmem %s2487_s0, %s1711_s17  ;;  %s2397_s13 = sand.u32 1, %s2138_s22  }
  0x67   : > { %739 = vmatprep.subr.bf16.mxu0 %v1850_v24  ;;  %782 = vmatprep.subr.bf16.mxu1 %v1852_v25  ;;  %v1905_v4 = vld [vmem:[#allocation2 + $0x40] ss:$16 sps:$4 sm:$0xff]   ;;  %v1908_v5 = vld [vmem:[#allocation2 + $0x48] ss:$16 sps:$4 sm:$0xff]   ;;  %v1913_v6 = vld [vmem:[#allocation2 + $0x64] ss:$16 sps:$4 sm:$0xff]  }
  0x68   : > { %v1916_v7 = vld [vmem:[#allocation2 + $0x6c] ss:$16 sps:$4 sm:$0xff]   ;;  %v1911_v8 = vld [vmem:[#allocation2 + $0x60] ss:$16 sps:$4 sm:$0xff]   ;;  %v1914_v9 = vld [vmem:[#allocation2 + $0x68] ss:$16 sps:$4 sm:$0xff]  }
  0x69   : > { %v1919_v10 = vld [vmem:[#allocation2 + $0x84] ss:$16 sps:$4 sm:$0xff]   ;;  %v1922_v11 = vld [vmem:[#allocation2 + $0x8c] ss:$16 sps:$4 sm:$0xff]   ;;  %v1917_v12 = vld [vmem:[#allocation2 + $0x80] ss:$16 sps:$4 sm:$0xff]  }
  0x6a   : > { %740 = vmatpush1.bf16.msra.mxu0 %v1854_v26  ;;  %783 = vmatpush1.bf16.msra.mxu1 %v1855_v27  ;;  %v1920_v13 = vld [vmem:[#allocation2 + $0x88] ss:$16 sps:$4 sm:$0xff]   ;;  %v1969_v14 = vld [vmem:[%s2335_s20 + $0x4] ss:$8 sps:$4 sm:$0xff]   ;;  %v1923_v17 = vld [vmem:[#allocation2 + $0xa0] ss:$16 sps:$4 sm:$0xff]  }
  0x6b   : > { %741 = vmatprep.subr.bf16.mxu0 %v1856_v28  ;;  %784 = vmatprep.subr.bf16.mxu1 %v1858_v29  ;;  %v1925_v15 = vld [vmem:[#allocation2 + $0xa4] ss:$16 sps:$4 sm:$0xff]   ;;  %v1928_v16 = vld [vmem:[#allocation2 + $0xac] ss:$16 sps:$4 sm:$0xff]   ;;  %v1926_v18 = vld [vmem:[#allocation2 + $0xa8] ss:$16 sps:$4 sm:$0xff]  }
  0x6c   : > { %v1931_v19 = vld [vmem:[#allocation2 + $0xc4] ss:$16 sps:$4 sm:$0xff]   ;;  %v1934_v20 = vld [vmem:[#allocation2 + $0xcc] ss:$16 sps:$4 sm:$0xff]   ;;  %v1929_v21 = vld [vmem:[#allocation2 + $0xc0] ss:$16 sps:$4 sm:$0xff]  }
  0x6d   : > { %v1932_v22 = vld [vmem:[#allocation2 + $0xc8] ss:$16 sps:$4 sm:$0xff]   ;;  %v1937_v23 = vld [vmem:[#allocation2 + $0xe4] ss:$16 sps:$4 sm:$0xff]   ;;  %v1940_v24 = vld [vmem:[#allocation2 + $0xec] ss:$16 sps:$4 sm:$0xff]  }
  0x6e   : > { %742 = vmatpush1.bf16.msra.mxu0 %v1860_v30  ;;  %785 = vmatpush1.bf16.msra.mxu1 %v1861_v31  ;;  %v1935_v25 = vld [vmem:[#allocation2 + $0xe0] ss:$16 sps:$4 sm:$0xff]   ;;  %v1938_v26 = vld [vmem:[#allocation2 + $0xe8] ss:$16 sps:$4 sm:$0xff]   ;;  %v1943_v27 = vld [vmem:[#allocation2 + $0x104] ss:$16 sps:$4 sm:$0xff]  }
  0x6f   : > { %743 = vmatprep.subr.bf16.mxu0 %v1862_v32  ;;  %786 = vmatprep.subr.bf16.mxu1 %v1864_v33  ;;  %v1946_v28 = vld [vmem:[#allocation2 + $0x10c] ss:$16 sps:$4 sm:$0xff]   ;;  %v1941_v29 = vld [vmem:[#allocation2 + $0x100] ss:$16 sps:$4 sm:$0xff]   ;;  %v1944_v30 = vld [vmem:[#allocation2 + $0x108] ss:$16 sps:$4 sm:$0xff]  }
  0x70   : > { %v1949_v31 = vld [vmem:[#allocation2 + $0x124] ss:$16 sps:$4 sm:$0xff]   ;;  %v1952_v32 = vld [vmem:[#allocation2 + $0x12c] ss:$16 sps:$4 sm:$0xff]   ;;  %v1947_v33 = vld [vmem:[#allocation2 + $0x120] ss:$16 sps:$4 sm:$0xff]  }
  0x71   : > { %v1956_v38 = vld [vmem:[#allocation2 + $0x148] ss:$16 sps:$4 sm:$0xff]   ;;  %v1972_v51 = vld [vmem:[%s2491_s4 + $0x40] sm:$0xff]   ;;  %s1565_s15 = sshll.u32 %s2397_s13, 4  ;;  %s1713_s14 = sshll.u32 %s2213_s25, 8 }
  0x72   : > { %744 = vmatpush1.bf16.msra.mxu0 %v1866_v34  ;;  %787 = vmatpush1.bf16.msra.mxu1 %v1867_v35  ;;  %v1950_v34 = vld [vmem:[#allocation2 + $0x128] ss:$16 sps:$4 sm:$0xff]   ;;  %v1955_v35 = vld [vmem:[#allocation2 + $0x144] ss:$16 sps:$4 sm:$0xff]   ;;  %s314_s9 = scalar_lea.vmem [#allocation7], %s1565_s15  ;;  %s2412_s16 = scalar_lea.hbm %s2492_s5, %s1713_s14 }
  0x73   : > { %745 = vmatprep.subr.bf16.mxu0 %v1868_v36  ;;  %788 = vmatprep.subr.bf16.mxu1 %v1870_v37  ;;  %v1958_v36 = vld [vmem:[#allocation2 + $0x14c] ss:$16 sps:$4 sm:$0xff]   ;;  %v1953_v37 = vld [vmem:[#allocation2 + $0x140] ss:$16 sps:$4 sm:$0xff]   ;;  %s1420_s12 = sshll.u32 %s314_s9, 4  ;;  %s1403_s17 = scalar_lea.sflag [#allocation4], %s2397_s13  ;;  %s2405_s12 = int_to_ptr.vmem [resolvable:$true] %s1420_s12 }
  0x74   : > { %v1974_v54 = vld [vmem:[%s2491_s4 + $0x48] sm:$0xff]   ;;  %s2044_s18 = scalar_lea.vmem %s2405_s12, 256  ;;  %p2506_p2 = scmp.ne.s32.totalorder %s2497_s7, 0 }
  0x75   : > { %p2045_p1 = scmp.ne.s32.totalorder %s2405_s12, %s2044_s18  ;;  %s2152_s19 = smov [#allocation7]  }
  0x76   : > { %746 = vmatpush1.bf16.msra.mxu0 %v1872_v39  ;;  %789 = vmatpush1.bf16.msra.mxu1 %v1873_v40  ;;  %v1961_v39 = vld [vmem:[#allocation2 + $0x164] ss:$16 sps:$4 sm:$0xff]   ;;  %v1964_v40 = vld [vmem:[#allocation2 + $0x16c] ss:$16 sps:$4 sm:$0xff]  }
  0x77   : > { %747 = vmatprep.subr.bf16.mxu0 %v1874_v41  ;;  %790 = vmatprep.subr.bf16.mxu1 %v1876_v42  ;;  %v397_v41 = vld [vmem:[#allocation2 + $0x180] sm:$0xff]  ;;  %v398_v42 = vld [vmem:[#allocation2 + $0x188] sm:$0xff]  ;;  %p2046_p3 = pnand %p2045_p1, %p2506_p2 }
  0x78   : > { %v1680_v47 = vcombine.low %v397_v41, %v397_v41  ;;  %v1682_v48 = vcombine.low %v398_v42, %v398_v42 }
  0x79   : > { %p2047_p4 = pneg %p2046_p3 }
  0x7a   : > { %748 = vmatpush1.bf16.msra.mxu0 %v1878_v43  ;;  %791 = vmatpush1.bf16.msra.mxu1 %v1879_v44  ;;  %v1959_v43 = vld [vmem:[#allocation2 + $0x160] ss:$16 sps:$4 sm:$0xff]   ;;  %v1962_v44 = vld [vmem:[#allocation2 + $0x168] ss:$16 sps:$4 sm:$0xff]  }
  0x7b   : > { %749 = vmatprep.subr.bf16.mxu0 %v1880_v45  ;;  %792 = vmatprep.subr.bf16.mxu1 %v1882_v46  ;;  %v1681_v45 = vcombine.high %v397_v41, %v397_v41  ;;  %v1683_v46 = vcombine.high %v398_v42, %v398_v42 }
  0x7e   : > { %750 = vmatpush1.bf16.msra.mxu0 %v1884_v49  ;;  %793 = vmatpush1.bf16.msra.mxu1 %v1885_v50  ;;  %v1076_v49 = vsel %vm714_vm1, %v1680_v47, 0  ;;  %v1082_v50 = vsel %vm714_vm1, %v1682_v48, 0 }
  0x7f   : > { %1626 = vmatprep.subr.msk.bf16.mxu0 %vm714_vm1, %v1623_v52  ;;  %1628 = vmatprep.subr.msk.bf16.mxu1 %vm714_vm1, %v1625_v53  ;;  %v1971_v52 = vld [vmem:[%s2335_s20] ss:$8 sps:$4 sm:$0xff]   ;;  %s2048_s20 = sshll.u32 %s2152_s19, 4  ;;  %s2049_s20 = int_to_ptr.vmem [resolvable:$false] %s2048_s20 }
  0x80   : > { %v1973_v53 = vld [vmem:[%s2491_s4] sm:$0xff]   ;;  %s2050_s26 = scalar_lea.vmem %s2049_s20, 512  ;;  %p2051_p7 = scmp.lt.s32.totalorder %s2405_s12, %s2049_s20 }
  0x81   : > { %p2052_p8 = scmp.lt.s32.totalorder %s2050_s26, %s2044_s18 }
  0x82   : > { %752 = vmatpush1.bf16.msra.mxu0 %v716_v55  ;;  %795 = vmatpush1.bf16.msra.mxu1 %v722_v56  ;;  %v1975_v55 = vld [vmem:[%s2491_s4 + $0x8] sm:$0xff]   ;;  %v1976_v56 = vld [vmem:[%s2491_s4 + $0x50] sm:$0xff]  }
  0x83   : > { %1087 = vmatprep.subr.bf16.mxu0 %v1895_v57  ;;  %1130 = vmatprep.subr.bf16.mxu1 %v1898_v58  ;;  %v1977_v57 = vld [vmem:[%s2491_s4 + $0x10] sm:$0xff]   ;;  %v1978_v58 = vld [vmem:[%s2491_s4 + $0x58] sm:$0xff]   ;;  %p2053_p11 = por %p2052_p8, %p2051_p7 }
  0x85   : > { %760 = vmatmul.mubr.bf16.vlgmr.msra.gmra.mrb[0].mxu0 %v1890_v59  ;;  %803 = vmatmul.mubr.bf16.vlgmr.msra.gmra.mrb[0].mxu1 %v1890_v59  ;;  %v1979_v59 = vld [vmem:[%s2491_s4 + $0x18] sm:$0xff]   ;;  %p2054_p13 = pnand %p2053_p11, %p2047_p4 }
  0x86   : > { %1088 = vmatpush1.bf16.msra.mxu0 %v1893_v60  ;;  %1131 = vmatpush1.bf16.msra.mxu1 %v1896_v61  ;;  %v1980_v60 = vld [vmem:[%s2491_s4 + $0x60] sm:$0xff]  }
  0x87   : > { %1089 = vmatprep.subr.bf16.mxu0 %v1901_v62  ;;  %1132 = vmatprep.subr.bf16.mxu1 %v1904_v63  ;;  %v1981_v61 = vld [vmem:[%s2491_s4 + $0x20] sm:$0xff]   ;;  %v1982_v62 = vld [vmem:[%s2491_s4 + $0x68] sm:$0xff]  }
  0x88   : > { %1685 = vmatprep.mubr.msk.bf16.mxu0 %vm710_vm0, %v1969_v14  ;;  %1687 = vmatprep.mubr.msk.bf16.mxu1 %vm710_vm0, %v1969_v14  ;;  %v1983_v63 = vld [vmem:[%s2491_s4 + $0x28] sm:$0xff]  }
  0x8a   : > { %1090 = vmatpush1.bf16.msra.mxu0 %v1899_v0  ;;  %1133 = vmatpush1.bf16.msra.mxu1 %v1902_v1  ;;  %v1984_v0 = vld [vmem:[%s2491_s4 + $0x70] sm:$0xff]  }
  0x8b   : > { %1091 = vmatprep.subr.bf16.mxu0 %v1907_v2  ;;  %1134 = vmatprep.subr.bf16.mxu1 %v1910_v3  ;;  %v1985_v1 = vld [vmem:[%s2491_s4 + $0x30] sm:$0xff]   ;;  %v1986_v2 = vld [vmem:[%s2491_s4 + $0x78] sm:$0xff]  }
  0x8c   : > { %v1987_v3 = vld [vmem:[%s2491_s4 + $0x38] sm:$0xff]  }
  0x8e   : > { %1092 = vmatpush1.bf16.msra.mxu0 %v1905_v4  ;;  %1135 = vmatpush1.bf16.msra.mxu1 %v1908_v5 }
  0x8f   : > { %1093 = vmatprep.subr.bf16.mxu0 %v1913_v6  ;;  %1136 = vmatprep.subr.bf16.mxu1 %v1916_v7 }
  0x92   : > { %1094 = vmatpush1.bf16.msra.mxu0 %v1911_v8  ;;  %1137 = vmatpush1.bf16.msra.mxu1 %v1914_v9 }
  0x93   : > { %1095 = vmatprep.subr.bf16.mxu0 %v1919_v10  ;;  %1138 = vmatprep.subr.bf16.mxu1 %v1922_v11 }
  0x96   : > { %1096 = vmatpush1.bf16.msra.mxu0 %v1917_v12  ;;  %1139 = vmatpush1.bf16.msra.mxu1 %v1920_v13 }
  0x97   : > { %1097 = vmatprep.subr.bf16.mxu0 %v1925_v15  ;;  %1140 = vmatprep.subr.bf16.mxu1 %v1928_v16 }
  0x9a   : > { %1098 = vmatpush1.bf16.msra.mxu0 %v1923_v17  ;;  %1141 = vmatpush1.bf16.msra.mxu1 %v1926_v18 }
  0x9b   : > { %1099 = vmatprep.subr.bf16.mxu0 %v1931_v19  ;;  %1142 = vmatprep.subr.bf16.mxu1 %v1934_v20 }
  0x9e   : > { %1100 = vmatpush1.bf16.msra.mxu0 %v1929_v21  ;;  %1143 = vmatpush1.bf16.msra.mxu1 %v1932_v22 }
  0x9f   : > { %1101 = vmatprep.subr.bf16.mxu0 %v1937_v23  ;;  %1144 = vmatprep.subr.bf16.mxu1 %v1940_v24 }
  0xa2   : > { %1102 = vmatpush1.bf16.msra.mxu0 %v1935_v25  ;;  %1145 = vmatpush1.bf16.msra.mxu1 %v1938_v26  ;;  %v1359_v26 = vlaneseq }
  0xa3   : > { %1103 = vmatprep.subr.bf16.mxu0 %v1943_v27  ;;  %1146 = vmatprep.subr.bf16.mxu1 %v1946_v28  ;;  %v1363_v28 = vstv %s1704_s11 }
  0xa4   : > { %v1360_v27 = vshrl.u32 %v1359_v26, 7 }
  0xa6   : > { %1104 = vmatpush1.bf16.msra.mxu0 %v1941_v29  ;;  %1147 = vmatpush1.bf16.msra.mxu1 %v1944_v30  ;;  %v1361_v29 = vadd.s32 8, %v1360_v27  ;;  %v1364_v30 = vadd.s32 %v1363_v28, %v1360_v27 }
  0xa7   : > { %1105 = vmatprep.subr.bf16.mxu0 %v1949_v31  ;;  %1148 = vmatprep.subr.bf16.mxu1 %v1952_v32 }
  0xa8   : > { %v1365_v31 = vadd.s32 %v1363_v28, %v1361_v29  ;;  %vm1366_vm3 = vcmp.lt.s32.totalorder %v1364_v30, 17 }
  0xaa   : > { %1106 = vmatpush1.bf16.msra.mxu0 %v1947_v33  ;;  %1149 = vmatpush1.bf16.msra.mxu1 %v1950_v34  ;;  %vm1367_vm4 = vcmp.lt.s32.totalorder %v1365_v31, 17 }
  0xab   : > { %1107 = vmatprep.subr.bf16.mxu0 %v1955_v35  ;;  %1150 = vmatprep.subr.bf16.mxu1 %v1958_v36 }
  0xae   : > { %1108 = vmatpush1.bf16.msra.mxu0 %v1953_v37  ;;  %1151 = vmatpush1.bf16.msra.mxu1 %v1956_v38 }
  0xaf   : > { %1109 = vmatprep.subr.bf16.mxu0 %v1961_v39  ;;  %1152 = vmatprep.subr.bf16.mxu1 %v1964_v40 }
  0xb2   : > { %1110 = vmatpush1.bf16.msra.mxu0 %v1959_v43  ;;  %1153 = vmatpush1.bf16.msra.mxu1 %v1962_v44 }
  0xb3   : > { %1684 = vmatprep.subr.msk.bf16.mxu0 %vm714_vm1, %v1681_v45  ;;  %1686 = vmatprep.subr.msk.bf16.mxu1 %vm714_vm1, %v1683_v46 }
  0xb6   : > { %1112 = vmatpush1.bf16.msra.mxu0 %v1076_v49  ;;  %1155 = vmatpush1.bf16.msra.mxu1 %v1082_v50 }
  0xb7   : > { %1714 = vmatprep.subr.bf16.mxu0 %v1972_v51 }
  0xb9   : > { %1120 = vmatmul.mubr.bf16.vlgmr.msra.gmra.mrb[0].mxu0 %v1971_v52  ;;  %1163 = vmatmul.mubr.bf16.vlgmr.msra.gmra.mrb[0].mxu1 %v1971_v52 }
  0xba   : > { %1715 = vmatpush3.bf16.msra.mxu0 %v1973_v53 }
  0xbb   : > { %1716 = vmatprep.subr.bf16.mxu0 %v1974_v54 }
  0xbe   : > { %1717 = vmatpush3.bf16.msra.mxu0 %v1975_v55 }
  0xbf   : > { %1718 = vmatprep.subr.bf16.mxu0 %v1976_v56 }
  0xc2   : > { %1719 = vmatpush3.bf16.msra.mxu0 %v1977_v57 }
  0xc3   : > { %1720 = vmatprep.subr.bf16.mxu0 %v1978_v58 }
  0xc6   : > { %1721 = vmatpush3.bf16.msra.mxu0 %v1979_v59 }
  0xc7   : > { %1722 = vmatprep.subr.bf16.mxu0 %v1980_v60 }
  0xca   : > { %1723 = vmatpush3.bf16.msra.mxu0 %v1981_v61 }
  0xcb   : > { %1724 = vmatprep.subr.bf16.mxu0 %v1982_v62 }
  0xce   : > { %1725 = vmatpush3.bf16.msra.mxu0 %v1983_v63 }
  0xcf   : > { %1726 = vmatprep.subr.bf16.mxu0 %v1984_v0 }
  0xd2   : > { %1727 = vmatpush3.bf16.msra.mxu0 %v1985_v1 }
  0xd3   : > { %1728 = vmatprep.subr.bf16.mxu0 %v1986_v2 }
  0xd6   : > { %1729 = vmatpush3.bf16.msra.mxu0 %v1987_v3 }
 0x18c   : > { %v1121_v4 = vpop.f32.mrb[0].mxu0  ;;  %v1164_v5 = vpop.f32.mrb[0].mxu1 }
 0x18d   : > { %v1173_v6 = vmul.f32 %v1121_v4, %v1121_v4  ;;  %v1177_v7 = vmul.f32 %v1164_v5, %v1164_v5  ;;  %v1123_v8 = vpop.f32.mrb[1].mxu0  ;;  %v1166_v9 = vpop.f32.mrb[1].mxu1 }
 0x18e   : > { %v1174_v10 = vmul.f32 %v1123_v8, %v1123_v8  ;;  %v1178_v11 = vmul.f32 %v1166_v9, %v1166_v9  ;;  %v1125_v12 = vpop.f32.mrb[2].mxu0  ;;  %v1168_v13 = vpop.f32.mrb[2].mxu1 }
 0x18f   : > { %v1181_v14 = vadd.f32 %v1177_v7, %v1173_v6  ;;  %v1175_v15 = vmul.f32 %v1125_v12, %v1125_v12  ;;  %v1179_v16 = vmul.f32 %v1168_v13, %v1168_v13  ;;  %v1127_v17 = vpop.f32.mrb[3].mxu0  ;;  %v1170_v18 = vpop.f32.mrb[3].mxu1 }
 0x190   : > { %v1182_v19 = vadd.f32 %v1178_v11, %v1174_v10  ;;  %v1176_v20 = vmul.f32 %v1127_v17, %v1127_v17  ;;  %v1180_v21 = vmul.f32 %v1170_v18, %v1170_v18 }
 0x191   : > { %v1183_v22 = vadd.f32 %v1179_v16, %v1175_v15 }
 0x192   : > { %v1184_v23 = vadd.f32 %v1180_v21, %v1176_v20 }
 0x193   : > { %v1185_v24 = vpack.c.bf16 %v1183_v22, %v1181_v14 }
 0x194   : > { %v1186_v25 = vpack.c.bf16 %v1184_v23, %v1182_v19 }
 0x196   : > { %1347 = vmatprep.mubr.bf16.mxu0 %v1186_v25 }
 0x197   : > { %1348 = vmatmul.mubr.bf16.vlgmr.msra.gmra.mrb[4].mxu0 %v1185_v24 }
 0x26a   : > { %v1730_v32 = vpop.f32.mrb[4].mxu0 }
 0x26b   : > { %v1731_v33 = vpop.f32.mrb[5].mxu0 }
 0x26c   : > { %v1732_v34 = vadd.f32 %v1731_v33, %v1730_v32  ;;  %v1733_v35 = vpop.f32.mrb[6].mxu0 }
 0x26d   : > { %v1734_v36 = vpop.f32.mrb[7].mxu0 }
 0x26e   : > { %1357 = vst.msk [vmem:[%s314_s9] sm:$0xff] %vm1356_vm2, %v1732_v34  ;;  %v1372_v37 = vsel %vm1366_vm3, %v1732_v34, 0.0  ;;  %v1735_v38 = vadd.f32 %v1734_v36, %v1733_v35 }
 0x26f   : > { %v1385_v39 = vmul.f32 %v1372_v37, %v1372_v37  ;;  %v1374_v41 = vsel %vm1356_vm2, %v1372_v37, 0.0 }
 0x270   : > { %1358 = vst.msk [vmem:[%s314_s9 + $0x8] sm:$0xff] %vm1356_vm2, %v1735_v38  ;;  %v1373_v40 = vsel %vm1367_vm4, %v1735_v38, 0.0 }
 0x271   : > { %v1375_v42 = vsel %vm1356_vm2, %v1373_v40, 0.0  ;;  %v1386_v43 = vmul.f32 %v1373_v40, %v1373_v40  ;;  %v1387_v45 = vsel %vm1356_vm2, %v1385_v39, 0.0 }
 0x272   : > { %v1376_v44 = vadd.f32 %v1375_v42, %v1374_v41 }
 0x273   : > { %v1388_v46 = vsel %vm1356_vm2, %v1386_v43, 0.0 }
 0x274   : > { %v1377_v47 = vrot.slane %v1376_v44, 4  ;;  %v1389_v48 = vadd.f32 %v1388_v46, %v1387_v45 }
 0x276   : > { %v1378_v49 = vadd.f32 %v1377_v47, %v1376_v44  ;;  %v1390_v50 = vrot.slane %v1389_v48, 4 }
 0x277   : > { %2057 = shalt.err (!%p2054_p13)
}
 0x278   : > { %s2058_s28 = scalar_lea.hbm %s2412_s16, 256  ;;  %s2062_s14 = scalar_lea.hbm %s2492_s5, 512 }
 0x279   : > { %p2059_p5 = scmp.ne.s32.totalorder %s2412_s16, %s2058_s28  ;;  %p2063_p9 = scmp.lt.u32.totalorder %s2412_s16, %s2492_s5 }
 0x27a   : > { %p2064_p12 = scmp.lt.u32.totalorder %s2062_s14, %s2058_s28  ;;  %p2066_p1 = scmp.lt.u32.totalorder %s2058_s28, %s2412_s16 }
 0x27b   : > { %p2060_p0 = pnand %p2059_p5, %p2506_p2 }
 0x27c   : > { %p2065_p10 = por %p2064_p12, %p2063_p9 }
 0x27d   : > { %p2061_p6 = pneg %p2060_p0 }
 0x27e   : > { %p2067_p3 = por %p2066_p1, %p2065_p10 }
 0x280   : > { %p2068_p4 = pnand %p2067_p3, %p2061_p6 }
 0x282   : > { %2071 = shalt.err (!%p2068_p4)
}
 0x283   : > { %s2153_s18 = smov 128   ;;  %s2154_s19 = smov 8   ;;  %v1379_v51 = vrot.slane %v1378_v49, 2  ;;  %v1391_v52 = vadd.f32 %v1390_v50, %v1389_v48  ;;  %vm1383_vm5 = vcmask 516096   ;;  %vm1400_vm6 = vcmask 1040896  }
 0x284   : > { %1752 = dma.vmem_to_hbm [thread:$0]  (%p2506_p2), %s2405_s12, 256, %s2412_s16, %s1403_s17, %s2153_s18, %s2153_s18, %s2154_s19  }
 0x285   : > { %v1380_v53 = vadd.f32 %v1379_v51, %v1378_v49  ;;  %v1392_v54 = vrot.slane %v1391_v52, 2  ;;  %s320_s20 = scalar_lea.vmem [#allocation8], %s2397_s13  ;;  %s2155_s26 = smov 64  }
 0x286   : > { %s1436_s28 = sshll.u32 %s320_s20, 4  ;;  %s2444_s17 = scalar_lea.hbm %s2493_s6, %s1704_s11  ;;  %s2446_s28 = int_to_ptr.vmem [resolvable:$true] %s1436_s28 }
 0x287   : > { %v1381_v55 = vrot.slane %v1380_v53, 1  ;;  %v1393_v56 = vadd.f32 %v1392_v54, %v1391_v52  ;;  %s1408_s15 = scalar_lea.sflag [#allocation9], %s2397_s13  ;;  %s2072_s9 = scalar_lea.vmem %s2446_s28, 16 }
 0x288   : > { %p2073_p7 = scmp.ne.s32.totalorder %s2446_s28, %s2072_s9  ;;  %s2156_s14 = smov [#allocation8]  }
 0x289   : > { %v1382_v57 = vadd.f32 %v1381_v55, %v1380_v53  ;;  %v1394_v58 = vrot.slane %v1393_v56, 1  ;;  %s2076_s25 = sshll.u32 %s2156_s14, 4  ;;  %s2077_s25 = int_to_ptr.vmem [resolvable:$false] %s2076_s25 }
 0x28a   : > { %p2074_p8 = pnand %p2073_p7, %p2506_p2  ;;  %s2078_s29 = scalar_lea.vmem %s2077_s25, 32 }
 0x28b   : > { %v1395_v59 = vadd.f32 %v1394_v58, %v1393_v56  ;;  %1384 = vst.msk [vmem:[%s320_s20] sm:$0x1] %vm1383_vm5, %v1382_v57  ;;  %p2079_p13 = scmp.lt.s32.totalorder %s2446_s28, %s2077_s25  ;;  %p2080_p5 = scmp.lt.s32.totalorder %s2078_s29, %s2072_s9 }
 0x28c   : > { %p2075_p11 = pneg %p2074_p8 }
 0x28d   : > { %1397 = vrot.lane.b32.xlu0 %v1395_v59, %s2155_s26  ;;  %p2081_p0 = por %p2080_p5, %p2079_p13 }
 0x28f   : > { %p2082_p6 = pnand %p2081_p0, %p2075_p11 }
 0x2ff   : > { %v1398_v60 = vpop.permute.xlu0 %1397 }
 0x300   : > { %1401 = vst.msk [vmem:[%s320_s20] sm:$0x1] %vm1400_vm6, %v1398_v60 }
 0x301   : > { %2085 = shalt.err (!%p2082_p6)
}
 0x302   : > { %s2086_s11 = scalar_lea.hbm %s2444_s17, 16  ;;  %s2090_s18 = scalar_lea.hbm %s2493_s6, 32 }
 0x303   : > { %p2087_p9 = scmp.ne.s32.totalorder %s2444_s17, %s2086_s11  ;;  %p2091_p1 = scmp.lt.u32.totalorder %s2444_s17, %s2493_s6 }
 0x304   : > { %p2092_p3 = scmp.lt.u32.totalorder %s2090_s18, %s2086_s11  ;;  %p2094_p7 = scmp.lt.u32.totalorder %s2086_s11, %s2444_s17 }
 0x305   : > { %p2088_p12 = pnand %p2087_p9, %p2506_p2 }
 0x306   : > { %p2093_p4 = por %p2092_p3, %p2091_p1 }
 0x307   : > { %p2089_p10 = pneg %p2088_p12 }
 0x308   : > { %p2095_p8 = por %p2094_p7, %p2093_p4 }
 0x30a   : > { %p2096_p11 = pnand %p2095_p8, %p2089_p10 }
 0x30c   : > { %2099 = shalt.err (!%p2096_p11)
}
 0x30d   : > { %1753 = dma.vmem_to_hbm [thread:$0]  (%p2506_p2), %s2446_s28, 16, %s2444_s17, %s1408_s15  }
 0x30e PF: > { %p1774_p13 = scmp.ge.s32.totalorder %s2146_s24, 2  ;;  %s1448_s26 = sand.u32 1, %s2134_s21  }
 0x30f   : > { %p2507_p5 = scmp.ne.s32.totalorder %s2498_s8, 0  ;;  %s1449_s12 = scalar_lea.sflag [#allocation4], %s1448_s26 }
 0x311   : > { %p1764_p0 = pnand %p1774_p13, %p2507_p5 }
 0x313   : > { %2125 = dma.done.wait (!%p1764_p0), %s1449_s12, 256  }
 0x314   : > { %2127 = vsyncadd (!%p1764_p0), %s1449_s12, 4294967040  ;;  %s1458_s16 = scalar_lea.sflag [#allocation9], %s1448_s26 }
 0x315   : > { %2129 = dma.done.wait (!%p1764_p0), %s1458_s16, 16  }
 0x316   : > { %2131 = vsyncadd (!%p1764_p0), %s1458_s16, 4294967280  ;;  %p22_p2 = scmp.ge.s32.totalorder %s2217_s27, 4   ;;  %s2508_s21 = smov %s2138_s22 }
 0x317   : > { %s2509_s22 = smov %s2142_s23  ;;  %s2510_s23 = smov %s2228_s30 }
 0x318   : > { %s2511_s24 = smov %s2217_s27  ;;  %24 = sbr.rel (!%p22_p2) target bundleno = 7 (0x7), region = 104 }
 0x31f   :  { %1462 = vsyncpa [#allocation3], 1 }
 0x320   :  { %1464 = vsyncpa [#allocation3 + $0x1], 1 }
 0x321   :  { %1465 = vsyncpa [#allocation6], 1 }
 0x322   :  { %1466 = vsyncpa [#allocation4], 1 }
 0x323   :  { %1468 = vsyncpa [#allocation4 + $0x1], 1 }
 0x324   :  { %1469 = vsyncpa [#allocation9], 1 }
 0x325   :  { %1471 = vsyncpa [#allocation9 + $0x1], 1 }

</bundles_post_ra>
